<compile_context>
chip_gen: v5e
topology: v5e:2x2
jax: 0.10.0
libtpu: 0.0.40
codegen_flags: <defaults>
</compile_context>

<pallas_src>
import math

import jax
import jax.numpy as jnp
import numpy as np
from jax.experimental import pallas as pl
from jax.experimental.pallas import tpu as pltpu

_EPS = 1e-5  # PyTorch GroupNorm default


def _round_up(a, m):
    return (a + m - 1) // m * m


def _pick_h_tile(H, C, r, W, esize):
    """h-rows per grid step: th | H and (th % 8 == 0 or th == H)."""
    if H % 8 == 0:
        cands = [t for t in range(8, H + 1, 8) if H % t == 0]
    else:
        cands = [H]

    def phys(t):  # tile-padded bytes of one output block (C, r, t, r, W*r)
        return C * r * t * _round_up(r, 8) * _round_up(W * r, 128) * esize

    best = cands[0]
    for t in cands:
        if phys(t) <= 4 * 2**20:
            best = max(best, t)
    return best


def _make_kernel(C, r, th, W):
    rows = C * r * r          # (o, kd, kh)
    WR = W * r

    def kernel(wf_ref, cb_ref, e_ref, x_ref, o_ref):
        # wf_ref: (r, C*r*r, C)       per-batch folded weights, leading dim = kw
        # cb_ref: (C*r*r, 1)          per-batch folded constant (per output row)
        # e_ref : (r, W, W*r)         constant 0/1 lane-spread matrices (col w -> lane w*r+kw)
        # x_ref : (C, th, W)          raw input rows for this (b, d, h-tile)
        # o_ref : (C, r, th, r, W*r)  output slab, dims (o, kd, h, kh, w*r+kw)
        cb = cb_ref[...]                                              # (rows, 1), f32
        for t in range(th):                                           # static unroll
            xt = x_ref[:, t, :]                                       # (C, W)
            acc = None
            for kw in range(r):                                       # static unroll
                part = jnp.dot(wf_ref[kw], xt,
                               preferred_element_type=jnp.float32)    # (rows, W)
                part = jnp.dot(part, e_ref[kw],
                               preferred_element_type=jnp.float32)    # (rows, W*r), lanes w*r+kw
                acc = part if acc is None else acc + part
            val = (acc + cb).reshape(C, r, r, WR)                     # leading-dim split only
            o_ref[:, :, t, :, :] = val.astype(o_ref.dtype)

    return kernel


def local_reverse_diffusion(x, wt, bt, gamma, beta, wp):
    """x: (B, C, D, H, W); wt: (C, r, r, r); bt/gamma/beta: (C,); wp: (C, C)."""
    B, C, D, H, W = x.shape
    r = wt.shape[-1]
    R3 = r * r * r
    S = D * H * W
    rows = C * r * r
    WR = W * r
    f32 = jnp.float32
    io_dtype = x.dtype
    esize = jnp.dtype(io_dtype).itemsize

    # ---- analytic GroupNorm(num_groups=1) stats from the un-expanded input (tiny pre-pass) ----
    x3 = x.reshape(B, C, S).astype(f32)
    wtf = wt.astype(f32)
    wt2 = wtf.reshape(C, R3)
    btf, gf, bef, wpf = bt.astype(f32), gamma.astype(f32), beta.astype(f32), wp.astype(f32)
    xs1 = jnp.sum(x3, axis=2)                         # (B, C)
    xs2 = jnp.sum(x3 * x3, axis=2)                    # (B, C)
    wk1 = jnp.sum(wt2, axis=1)                        # (C,)
    wk2 = jnp.sum(wt2 * wt2, axis=1)                  # (C,)
    n_tot = float(C * R3 * S)
    mu = (jnp.sum(xs1 * wk1[None, :], axis=1) + (R3 * S) * jnp.sum(btf)) / n_tot      # (B,)
    bc = btf[None, :] - mu[:, None]                                                   # (B, C)
    var = jnp.sum(wk2[None, :] * xs2 + 2.0 * bc * wk1[None, :] * xs1
                  + (R3 * S) * bc * bc, axis=1) / n_tot
    inv = 1.0 / jnp.sqrt(var + _EPS)                                                  # (B,)
    # TODO(synk): for very large volumes switch xs1/xs2 to a compensated two-level sum to track
    # PyTorch's two-pass GroupNorm statistics more tightly.

    # ---- fold everything into Wf[b, kw, (o,kd,kh), c] and Cb[b, (o,kd,kh)] -------------------
    base = jnp.einsum('oc,caek->koaec', wpf * gf[None, :], wtf)       # (kw, o, kd, kh, c)
    base = base.reshape(r, rows, C)
    wf4 = (inv[:, None, None, None] * base[None]).astype(io_dtype)    # (B, r, rows, C)

    cb = jnp.einsum('oc,bc->bo', wpf,
                    gf[None, :] * inv[:, None] * bc + bef[None, :])   # (B, C)
    cbig = jnp.repeat(cb, r * r, axis=1)[:, :, None].astype(f32)      # (B, rows, 1)

    # constant lane-spread matrices: E[kw, w, w*r+kw] = 1
    e_np = np.zeros((r, W, WR), dtype=np.float32)
    for m in range(r):
        e_np[m, np.arange(W), np.arange(W) * r + m] = 1.0
    e_mat = jnp.asarray(e_np)

    # ---- tiling: exact division, lane-dense output (last dim W*r), resident weights ----------
    th = _pick_h_tile(H, C, r, W, esize)
    grid = (B, D, H // th)
    x_in = x.reshape(B * C, D, H, W)                                  # free reshape, dtype kept

    # rough physical VMEM accounting (incl. (8,128) tile padding, double buffers)
    out_blk = C * r * th * _round_up(r, 8) * _round_up(WR, 128) * esize
    x_blk = C * _round_up(th, 8) * _round_up(W, 128) * esize
    wf_blk = r * _round_up(rows, 8) * _round_up(C, 128) * esize
    e_blk = r * _round_up(W, 8) * _round_up(WR, 128) * 4
    cb_blk = _round_up(rows, 8) * 128 * 4
    phys = 2 * (out_blk + x_blk + wf_blk + e_blk + cb_blk)
    vmem_limit = int(min(48 * 2**20, max(16 * 2**20, 3 * phys)))      # conservative for v7x 64MiB/TC

    kernel = _make_kernel(C, r, th, W)

    out5 = pl.pallas_call(
        kernel,
        out_shape=jax.ShapeDtypeStruct((B * C, D * r, H, r, WR), io_dtype),
        grid_spec=pltpu.PrefetchScalarGridSpec(
            num_scalar_prefetch=0,
            grid=grid,
            in_specs=[
                pl.BlockSpec((None, r, rows, C), lambda b, d, t: (b, 0, 0, 0)),   # Wf (per-b resident)
                pl.BlockSpec((None, rows, 1), lambda b, d, t: (b, 0, 0)),         # Cb
                pl.BlockSpec((r, W, WR), lambda b, d, t: (0, 0, 0)),              # E  (resident)
                pl.BlockSpec((C, None, th, W), lambda b, d, t: (b, d, t, 0)),     # x
            ],
            out_specs=pl.BlockSpec((C, r, th, r, WR),
                                   lambda b, d, t: (b, d, t, 0, 0)),
        ),
        compiler_params=pltpu.CompilerParams(
            dimension_semantics=("parallel", "parallel", "parallel"),
            vmem_limit_bytes=vmem_limit,
        ),
    )(wf4, cbig, e_mat, x_in)

    # Free reshape (adjacent-dim merges only): (B*C, D*r, H, r, W*r) -> (B, C, D*r, H*r, W*r).
    # In real workloads pick W so that W*r is a multiple of 128 for fully lane-dense stores.
    return out5.reshape(B, C, D * r, H * r, W * r)


def _reference(x, wt, bt, gamma, beta, wp):
    """Pure-JAX reference of the PyTorch forward (NCDHW)."""
    B, C, D, H, W = x.shape
    r = wt.shape[-1]
    y = (x[:, :, :, None, :, None, :, None] *
         wt[None, :, None, :, None, :, None, :])            # (B,C,D,r,H,r,W,r)
    y = y + bt[None, :, None, None, None, None, None, None]
    y = y.reshape(B, C, D * r, H * r, W * r)
    mu = jnp.mean(y, axis=(1, 2, 3, 4), keepdims=True)
    var = jnp.mean((y - mu) ** 2, axis=(1, 2, 3, 4), keepdims=True)
    yn = (y - mu) / jnp.sqrt(var + _EPS)
    ya = yn * gamma[None, :, None, None, None] + beta[None, :, None, None, None]
    return jnp.einsum('oc,bcdhw->bodhw', wp, ya)


if __name__ == "__main__":
    B, C, D, H, W, r = 2, 4, 4, 4, 4, 2

    key = jax.random.PRNGKey(0)
    k1, k2, k3, k4, k5, k6 = jax.random.split(key, 6)

    x = jax.random.normal(k1, (B, C, D, H, W), jnp.float32)
    wt = 0.2 * jax.random.normal(k2, (C, r, r, r), jnp.float32)      # ConvTranspose3d weight (C,1,r,r,r) squeezed
    bt = 0.1 * jax.random.normal(k3, (C,), jnp.float32)              # ConvTranspose3d bias
    gamma = 1.0 + 0.1 * jax.random.normal(k4, (C,), jnp.float32)     # GroupNorm weight
    beta = 0.1 * jax.random.normal(k5, (C,), jnp.float32)            # GroupNorm bias
    wp = jax.random.normal(k6, (C, C), jnp.float32) / math.sqrt(C)   # Conv3d 1x1x1 weight (C,C,1,1,1) squeezed

    lrd = jax.jit(local_reverse_diffusion)
    out = jax.block_until_ready(lrd(x, wt, bt, gamma, beta, wp))
    ref = jax.block_until_ready(_reference(x, wt, bt, gamma, beta, wp))

    assert out.shape == (B, C, D * r, H * r, W * r), out.shape
    np.testing.assert_allclose(np.asarray(out), np.asarray(ref), rtol=1e-4, atol=1e-4)
    print("KERNEL_OK")
</pallas_src>

<mosaic_0001>
module attributes {stable_mosaic.version = 11 : i64} {
  func.func @kernel(%arg0: i32, %arg1: i32, %arg2: i32, %arg3: memref<1x2x16x4xf32, #tpu.memory_space<vmem>>, %arg4: memref<1x16x1xf32, #tpu.memory_space<vmem>>, %arg5: memref<2x4x8xf32, #tpu.memory_space<vmem>>, %arg6: memref<4x1x4x4xf32, #tpu.memory_space<vmem>>, %arg7: memref<4x2x4x2x8xf32, #tpu.memory_space<vmem>>) attributes {dimension_semantics = [#tpu.dimension_semantics<parallel>, #tpu.dimension_semantics<parallel>, #tpu.dimension_semantics<parallel>], iteration_bounds = array<i64: 2, 4, 1>, scalar_prefetch = 0 : i64, scratch_operands = 0 : i64, tpu.core_type = #tpu.core_type<tc>, window_params = [{transform_indices = @transform_0, window_bounds = array<i64: 1, 2, 16, 4>}, {transform_indices = @transform_1, window_bounds = array<i64: 1, 16, 1>}, {pipeline_mode = #tpu.pipeline_mode<synchronous>, transform_indices = @transform_2, window_bounds = array<i64: 2, 4, 8>}, {transform_indices = @transform_3, window_bounds = array<i64: 4, 1, 4, 4>}, {transform_indices = @transform_4, window_bounds = array<i64: 4, 2, 4, 2, 8>}]} {
    %c0 = arith.constant 0 : index
    %c0_0 = arith.constant 0 : index
    %c0_1 = arith.constant 0 : index
    %0 = vector.load %arg4[%c0, %c0_0, %c0_1] : memref<1x16x1xf32, #tpu.memory_space<vmem>>, vector<1x16x1xf32>
    %1 = vector.shape_cast %0 : vector<1x16x1xf32> to vector<16x1xf32>
    %c0_2 = arith.constant 0 : index
    %c0_3 = arith.constant 0 : index
    %c0_4 = arith.constant 0 : index
    %c0_5 = arith.constant 0 : index
    %2 = vector.load %arg6[%c0_2, %c0_3, %c0_4, %c0_5] : memref<4x1x4x4xf32, #tpu.memory_space<vmem>>, vector<4x1x1x4xf32>
    %3 = vector.shape_cast %2 : vector<4x1x1x4xf32> to vector<4x4xf32>
    %c0_6 = arith.constant 0 : index
    %c0_7 = arith.constant 0 : index
    %c0_8 = arith.constant 0 : index
    %c0_9 = arith.constant 0 : index
    %4 = vector.load %arg3[%c0_6, %c0_7, %c0_8, %c0_9] : memref<1x2x16x4xf32, #tpu.memory_space<vmem>>, vector<1x1x16x4xf32>
    %5 = vector.shape_cast %4 : vector<1x1x16x4xf32> to vector<16x4xf32>
    %cst = arith.constant dense<0.000000e+00> : vector<16x4xf32>
    %6 = tpu.matmul %5, %3, %cst {dimension_numbers = #tpu.dot_dimension_numbers<[1], [0], [0], [1], [0, 0, 1, 1], [], []>} : vector<16x4xf32>, vector<4x4xf32>, vector<16x4xf32> -> vector<16x4xf32>
    %c0_10 = arith.constant 0 : index
    %c0_11 = arith.constant 0 : index
    %c0_12 = arith.constant 0 : index
    %7 = vector.load %arg5[%c0_10, %c0_11, %c0_12] : memref<2x4x8xf32, #tpu.memory_space<vmem>>, vector<1x4x8xf32>
    %8 = vector.shape_cast %7 : vector<1x4x8xf32> to vector<4x8xf32>
    %cst_13 = arith.constant dense<0.000000e+00> : vector<16x8xf32>
    %9 = tpu.matmul %6, %8, %cst_13 {dimension_numbers = #tpu.dot_dimension_numbers<[1], [0], [0], [1], [0, 0, 1, 1], [], []>} : vector<16x4xf32>, vector<4x8xf32>, vector<16x8xf32> -> vector<16x8xf32>
    %c0_14 = arith.constant 0 : index
    %c1 = arith.constant 1 : index
    %c0_15 = arith.constant 0 : index
    %c0_16 = arith.constant 0 : index
    %10 = vector.load %arg3[%c0_14, %c1, %c0_15, %c0_16] : memref<1x2x16x4xf32, #tpu.memory_space<vmem>>, vector<1x1x16x4xf32>
    %11 = vector.shape_cast %10 : vector<1x1x16x4xf32> to vector<16x4xf32>
    %cst_17 = arith.constant dense<0.000000e+00> : vector<16x4xf32>
    %12 = tpu.matmul %11, %3, %cst_17 {dimension_numbers = #tpu.dot_dimension_numbers<[1], [0], [0], [1], [0, 0, 1, 1], [], []>} : vector<16x4xf32>, vector<4x4xf32>, vector<16x4xf32> -> vector<16x4xf32>
    %c1_18 = arith.constant 1 : index
    %c0_19 = arith.constant 0 : index
    %c0_20 = arith.constant 0 : index
    %13 = vector.load %arg5[%c1_18, %c0_19, %c0_20] : memref<2x4x8xf32, #tpu.memory_space<vmem>>, vector<1x4x8xf32>
    %14 = vector.shape_cast %13 : vector<1x4x8xf32> to vector<4x8xf32>
    %cst_21 = arith.constant dense<0.000000e+00> : vector<16x8xf32>
    %15 = tpu.matmul %12, %14, %cst_21 {dimension_numbers = #tpu.dot_dimension_numbers<[1], [0], [0], [1], [0, 0, 1, 1], [], []>} : vector<16x4xf32>, vector<4x8xf32>, vector<16x8xf32> -> vector<16x8xf32>
    %16 = arith.addf %9, %15 : vector<16x8xf32>
    %17 = vector.broadcast %1 : vector<16x1xf32> to vector<16x8xf32>
    %18 = arith.addf %16, %17 : vector<16x8xf32>
    %19 = vector.shape_cast %18 : vector<16x8xf32> to vector<4x2x2x8xf32>
    %c0_22 = arith.constant 0 : index
    %c0_23 = arith.constant 0 : index
    %c0_24 = arith.constant 0 : index
    %c0_25 = arith.constant 0 : index
    %c0_26 = arith.constant 0 : index
    %20 = vector.load %arg7[%c0_22, %c0_23, %c0_24, %c0_25, %c0_26] : memref<4x2x4x2x8xf32, #tpu.memory_space<vmem>>, vector<4x2x1x2x8xf32>
    %21 = vector.shape_cast %20 : vector<4x2x1x2x8xf32> to vector<4x2x2x8xf32>
    %22 = vector.shape_cast %19 : vector<4x2x2x8xf32> to vector<4x2x1x2x8xf32>
    tpu.vector_store %arg7[%c0_22, %c0_23, %c0_24, %c0_25, %c0_26], %22 {strides = array<i32>} : memref<4x2x4x2x8xf32, #tpu.memory_space<vmem>>, vector<4x2x1x2x8xf32>,
    %c0_27 = arith.constant 0 : index
    %c0_28 = arith.constant 0 : index
    %c1_29 = arith.constant 1 : index
    %c0_30 = arith.constant 0 : index
    %23 = vector.load %arg6[%c0_27, %c0_28, %c1_29, %c0_30] : memref<4x1x4x4xf32, #tpu.memory_space<vmem>>, vector<4x1x1x4xf32>
    %24 = vector.shape_cast %23 : vector<4x1x1x4xf32> to vector<4x4xf32>
    %c0_31 = arith.constant 0 : index
    %c0_32 = arith.constant 0 : index
    %c0_33 = arith.constant 0 : index
    %c0_34 = arith.constant 0 : index
    %25 = vector.load %arg3[%c0_31, %c0_32, %c0_33, %c0_34] : memref<1x2x16x4xf32, #tpu.memory_space<vmem>>, vector<1x1x16x4xf32>
    %26 = vector.shape_cast %25 : vector<1x1x16x4xf32> to vector<16x4xf32>
    %cst_35 = arith.constant dense<0.000000e+00> : vector<16x4xf32>
    %27 = tpu.matmul %26, %24, %cst_35 {dimension_numbers = #tpu.dot_dimension_numbers<[1], [0], [0], [1], [0, 0, 1, 1], [], []>} : vector<16x4xf32>, vector<4x4xf32>, vector<16x4xf32> -> vector<16x4xf32>
    %c0_36 = arith.constant 0 : index
    %c0_37 = arith.constant 0 : index
    %c0_38 = arith.constant 0 : index
    %28 = vector.load %arg5[%c0_36, %c0_37, %c0_38] : memref<2x4x8xf32, #tpu.memory_space<vmem>>, vector<1x4x8xf32>
    %29 = vector.shape_cast %28 : vector<1x4x8xf32> to vector<4x8xf32>
    %cst_39 = arith.constant dense<0.000000e+00> : vector<16x8xf32>
    %30 = tpu.matmul %27, %29, %cst_39 {dimension_numbers = #tpu.dot_dimension_numbers<[1], [0], [0], [1], [0, 0, 1, 1], [], []>} : vector<16x4xf32>, vector<4x8xf32>, vector<16x8xf32> -> vector<16x8xf32>
    %c0_40 = arith.constant 0 : index
    %c1_41 = arith.constant 1 : index
    %c0_42 = arith.constant 0 : index
    %c0_43 = arith.constant 0 : index
    %31 = vector.load %arg3[%c0_40, %c1_41, %c0_42, %c0_43] : memref<1x2x16x4xf32, #tpu.memory_space<vmem>>, vector<1x1x16x4xf32>
    %32 = vector.shape_cast %31 : vector<1x1x16x4xf32> to vector<16x4xf32>
    %cst_44 = arith.constant dense<0.000000e+00> : vector<16x4xf32>
    %33 = tpu.matmul %32, %24, %cst_44 {dimension_numbers = #tpu.dot_dimension_numbers<[1], [0], [0], [1], [0, 0, 1, 1], [], []>} : vector<16x4xf32>, vector<4x4xf32>, vector<16x4xf32> -> vector<16x4xf32>
    %c1_45 = arith.constant 1 : index
    %c0_46 = arith.constant 0 : index
    %c0_47 = arith.constant 0 : index
    %34 = vector.load %arg5[%c1_45, %c0_46, %c0_47] : memref<2x4x8xf32, #tpu.memory_space<vmem>>, vector<1x4x8xf32>
    %35 = vector.shape_cast %34 : vector<1x4x8xf32> to vector<4x8xf32>
    %cst_48 = arith.constant dense<0.000000e+00> : vector<16x8xf32>
    %36 = tpu.matmul %33, %35, %cst_48 {dimension_numbers = #tpu.dot_dimension_numbers<[1], [0], [0], [1], [0, 0, 1, 1], [], []>} : vector<16x4xf32>, vector<4x8xf32>, vector<16x8xf32> -> vector<16x8xf32>
    %37 = arith.addf %30, %36 : vector<16x8xf32>
    %38 = vector.broadcast %1 : vector<16x1xf32> to vector<16x8xf32>
    %39 = arith.addf %37, %38 : vector<16x8xf32>
    %40 = vector.shape_cast %39 : vector<16x8xf32> to vector<4x2x2x8xf32>
    %c0_49 = arith.constant 0 : index
    %c0_50 = arith.constant 0 : index
    %c1_51 = arith.constant 1 : index
    %c0_52 = arith.constant 0 : index
    %c0_53 = arith.constant 0 : index
    %41 = vector.load %arg7[%c0_49, %c0_50, %c1_51, %c0_52, %c0_53] : memref<4x2x4x2x8xf32, #tpu.memory_space<vmem>>, vector<4x2x1x2x8xf32>
    %42 = vector.shape_cast %41 : vector<4x2x1x2x8xf32> to vector<4x2x2x8xf32>
    %43 = vector.shape_cast %40 : vector<4x2x2x8xf32> to vector<4x2x1x2x8xf32>
    tpu.vector_store %arg7[%c0_49, %c0_50, %c1_51, %c0_52, %c0_53], %43 {strides = array<i32>} : memref<4x2x4x2x8xf32, #tpu.memory_space<vmem>>, vector<4x2x1x2x8xf32>,
    %c0_54 = arith.constant 0 : index
    %c0_55 = arith.constant 0 : index
    %c2 = arith.constant 2 : index
    %c0_56 = arith.constant 0 : index
    %44 = vector.load %arg6[%c0_54, %c0_55, %c2, %c0_56] : memref<4x1x4x4xf32, #tpu.memory_space<vmem>>, vector<4x1x1x4xf32>
    %45 = vector.shape_cast %44 : vector<4x1x1x4xf32> to vector<4x4xf32>
    %c0_57 = arith.constant 0 : index
    %c0_58 = arith.constant 0 : index
    %c0_59 = arith.constant 0 : index
    %c0_60 = arith.constant 0 : index
    %46 = vector.load %arg3[%c0_57, %c0_58, %c0_59, %c0_60] : memref<1x2x16x4xf32, #tpu.memory_space<vmem>>, vector<1x1x16x4xf32>
    %47 = vector.shape_cast %46 : vector<1x1x16x4xf32> to vector<16x4xf32>
    %cst_61 = arith.constant dense<0.000000e+00> : vector<16x4xf32>
    %48 = tpu.matmul %47, %45, %cst_61 {dimension_numbers = #tpu.dot_dimension_numbers<[1], [0], [0], [1], [0, 0, 1, 1], [], []>} : vector<16x4xf32>, vector<4x4xf32>, vector<16x4xf32> -> vector<16x4xf32>
    %c0_62 = arith.constant 0 : index
    %c0_63 = arith.constant 0 : index
    %c0_64 = arith.constant 0 : index
    %49 = vector.load %arg5[%c0_62, %c0_63, %c0_64] : memref<2x4x8xf32, #tpu.memory_space<vmem>>, vector<1x4x8xf32>
    %50 = vector.shape_cast %49 : vector<1x4x8xf32> to vector<4x8xf32>
    %cst_65 = arith.constant dense<0.000000e+00> : vector<16x8xf32>
    %51 = tpu.matmul %48, %50, %cst_65 {dimension_numbers = #tpu.dot_dimension_numbers<[1], [0], [0], [1], [0, 0, 1, 1], [], []>} : vector<16x4xf32>, vector<4x8xf32>, vector<16x8xf32> -> vector<16x8xf32>
    %c0_66 = arith.constant 0 : index
    %c1_67 = arith.constant 1 : index
    %c0_68 = arith.constant 0 : index
    %c0_69 = arith.constant 0 : index
    %52 = vector.load %arg3[%c0_66, %c1_67, %c0_68, %c0_69] : memref<1x2x16x4xf32, #tpu.memory_space<vmem>>, vector<1x1x16x4xf32>
    %53 = vector.shape_cast %52 : vector<1x1x16x4xf32> to vector<16x4xf32>
    %cst_70 = arith.constant dense<0.000000e+00> : vector<16x4xf32>
    %54 = tpu.matmul %53, %45, %cst_70 {dimension_numbers = #tpu.dot_dimension_numbers<[1], [0], [0], [1], [0, 0, 1, 1], [], []>} : vector<16x4xf32>, vector<4x4xf32>, vector<16x4xf32> -> vector<16x4xf32>
    %c1_71 = arith.constant 1 : index
    %c0_72 = arith.constant 0 : index
    %c0_73 = arith.constant 0 : index
    %55 = vector.load %arg5[%c1_71, %c0_72, %c0_73] : memref<2x4x8xf32, #tpu.memory_space<vmem>>, vector<1x4x8xf32>
    %56 = vector.shape_cast %55 : vector<1x4x8xf32> to vector<4x8xf32>
    %cst_74 = arith.constant dense<0.000000e+00> : vector<16x8xf32>
    %57 = tpu.matmul %54, %56, %cst_74 {dimension_numbers = #tpu.dot_dimension_numbers<[1], [0], [0], [1], [0, 0, 1, 1], [], []>} : vector<16x4xf32>, vector<4x8xf32>, vector<16x8xf32> -> vector<16x8xf32>
    %58 = arith.addf %51, %57 : vector<16x8xf32>
    %59 = vector.broadcast %1 : vector<16x1xf32> to vector<16x8xf32>
    %60 = arith.addf %58, %59 : vector<16x8xf32>
    %61 = vector.shape_cast %60 : vector<16x8xf32> to vector<4x2x2x8xf32>
    %c0_75 = arith.constant 0 : index
    %c0_76 = arith.constant 0 : index
    %c2_77 = arith.constant 2 : index
    %c0_78 = arith.constant 0 : index
    %c0_79 = arith.constant 0 : index
    %62 = vector.load %arg7[%c0_75, %c0_76, %c2_77, %c0_78, %c0_79] : memref<4x2x4x2x8xf32, #tpu.memory_space<vmem>>, vector<4x2x1x2x8xf32>
    %63 = vector.shape_cast %62 : vector<4x2x1x2x8xf32> to vector<4x2x2x8xf32>
    %64 = vector.shape_cast %61 : vector<4x2x2x8xf32> to vector<4x2x1x2x8xf32>
    tpu.vector_store %arg7[%c0_75, %c0_76, %c2_77, %c0_78, %c0_79], %64 {strides = array<i32>} : memref<4x2x4x2x8xf32, #tpu.memory_space<vmem>>, vector<4x2x1x2x8xf32>,
    %c0_80 = arith.constant 0 : index
    %c0_81 = arith.constant 0 : index
    %c3 = arith.constant 3 : index
    %c0_82 = arith.constant 0 : index
    %65 = vector.load %arg6[%c0_80, %c0_81, %c3, %c0_82] : memref<4x1x4x4xf32, #tpu.memory_space<vmem>>, vector<4x1x1x4xf32>
    %66 = vector.shape_cast %65 : vector<4x1x1x4xf32> to vector<4x4xf32>
    %c0_83 = arith.constant 0 : index
    %c0_84 = arith.constant 0 : index
    %c0_85 = arith.constant 0 : index
    %c0_86 = arith.constant 0 : index
    %67 = vector.load %arg3[%c0_83, %c0_84, %c0_85, %c0_86] : memref<1x2x16x4xf32, #tpu.memory_space<vmem>>, vector<1x1x16x4xf32>
    %68 = vector.shape_cast %67 : vector<1x1x16x4xf32> to vector<16x4xf32>
    %cst_87 = arith.constant dense<0.000000e+00> : vector<16x4xf32>
    %69 = tpu.matmul %68, %66, %cst_87 {dimension_numbers = #tpu.dot_dimension_numbers<[1], [0], [0], [1], [0, 0, 1, 1], [], []>} : vector<16x4xf32>, vector<4x4xf32>, vector<16x4xf32> -> vector<16x4xf32>
    %c0_88 = arith.constant 0 : index
    %c0_89 = arith.constant 0 : index
    %c0_90 = arith.constant 0 : index
    %70 = vector.load %arg5[%c0_88, %c0_89, %c0_90] : memref<2x4x8xf32, #tpu.memory_space<vmem>>, vector<1x4x8xf32>
    %71 = vector.shape_cast %70 : vector<1x4x8xf32> to vector<4x8xf32>
    %cst_91 = arith.constant dense<0.000000e+00> : vector<16x8xf32>
    %72 = tpu.matmul %69, %71, %cst_91 {dimension_numbers = #tpu.dot_dimension_numbers<[1], [0], [0], [1], [0, 0, 1, 1], [], []>} : vector<16x4xf32>, vector<4x8xf32>, vector<16x8xf32> -> vector<16x8xf32>
    %c0_92 = arith.constant 0 : index
    %c1_93 = arith.constant 1 : index
    %c0_94 = arith.constant 0 : index
    %c0_95 = arith.constant 0 : index
    %73 = vector.load %arg3[%c0_92, %c1_93, %c0_94, %c0_95] : memref<1x2x16x4xf32, #tpu.memory_space<vmem>>, vector<1x1x16x4xf32>
    %74 = vector.shape_cast %73 : vector<1x1x16x4xf32> to vector<16x4xf32>
    %cst_96 = arith.constant dense<0.000000e+00> : vector<16x4xf32>
    %75 = tpu.matmul %74, %66, %cst_96 {dimension_numbers = #tpu.dot_dimension_numbers<[1], [0], [0], [1], [0, 0, 1, 1], [], []>} : vector<16x4xf32>, vector<4x4xf32>, vector<16x4xf32> -> vector<16x4xf32>
    %c1_97 = arith.constant 1 : index
    %c0_98 = arith.constant 0 : index
    %c0_99 = arith.constant 0 : index
    %76 = vector.load %arg5[%c1_97, %c0_98, %c0_99] : memref<2x4x8xf32, #tpu.memory_space<vmem>>, vector<1x4x8xf32>
    %77 = vector.shape_cast %76 : vector<1x4x8xf32> to vector<4x8xf32>
    %cst_100 = arith.constant dense<0.000000e+00> : vector<16x8xf32>
    %78 = tpu.matmul %75, %77, %cst_100 {dimension_numbers = #tpu.dot_dimension_numbers<[1], [0], [0], [1], [0, 0, 1, 1], [], []>} : vector<16x4xf32>, vector<4x8xf32>, vector<16x8xf32> -> vector<16x8xf32>
    %79 = arith.addf %72, %78 : vector<16x8xf32>
    %80 = vector.broadcast %1 : vector<16x1xf32> to vector<16x8xf32>
    %81 = arith.addf %79, %80 : vector<16x8xf32>
    %82 = vector.shape_cast %81 : vector<16x8xf32> to vector<4x2x2x8xf32>
    %c0_101 = arith.constant 0 : index
    %c0_102 = arith.constant 0 : index
    %c3_103 = arith.constant 3 : index
    %c0_104 = arith.constant 0 : index
    %c0_105 = arith.constant 0 : index
    %83 = vector.load %arg7[%c0_101, %c0_102, %c3_103, %c0_104, %c0_105] : memref<4x2x4x2x8xf32, #tpu.memory_space<vmem>>, vector<4x2x1x2x8xf32>
    %84 = vector.shape_cast %83 : vector<4x2x1x2x8xf32> to vector<4x2x2x8xf32>
    %85 = vector.shape_cast %82 : vector<4x2x2x8xf32> to vector<4x2x1x2x8xf32>
    tpu.vector_store %arg7[%c0_101, %c0_102, %c3_103, %c0_104, %c0_105], %85 {strides = array<i32>} : memref<4x2x4x2x8xf32, #tpu.memory_space<vmem>>, vector<4x2x1x2x8xf32>,
    return
  }
  func.func @transform_0(%arg0: i32, %arg1: i32, %arg2: i32) -> (i32, i32, i32, i32) {
    %c0_i32 = arith.constant 0 : i32
    %c0_i32_0 = arith.constant 0 : i32
    %c0_i32_1 = arith.constant 0 : i32
    %c0_i32_2 = arith.constant 0 : i32
    return %arg0, %c0_i32, %c0_i32_0, %c0_i32_1 : i32, i32, i32, i32
  }
  func.func @transform_1(%arg0: i32, %arg1: i32, %arg2: i32) -> (i32, i32, i32) {
    %c0_i32 = arith.constant 0 : i32
    %c0_i32_0 = arith.constant 0 : i32
    %c0_i32_1 = arith.constant 0 : i32
    return %arg0, %c0_i32, %c0_i32_0 : i32, i32, i32
  }
  func.func @transform_2(%arg0: i32, %arg1: i32, %arg2: i32) -> (i32, i32, i32) {
    %c0_i32 = arith.constant 0 : i32
    %c0_i32_0 = arith.constant 0 : i32
    %c0_i32_1 = arith.constant 0 : i32
    %c0_i32_2 = arith.constant 0 : i32
    return %c0_i32, %c0_i32_0, %c0_i32_1 : i32, i32, i32
  }
  func.func @transform_3(%arg0: i32, %arg1: i32, %arg2: i32) -> (i32, i32, i32, i32) {
    %c0_i32 = arith.constant 0 : i32
    %c0_i32_0 = arith.constant 0 : i32
    return %arg0, %arg1, %arg2, %c0_i32 : i32, i32, i32, i32
  }
  func.func @transform_4(%arg0: i32, %arg1: i32, %arg2: i32) -> (i32, i32, i32, i32, i32) {
    %c0_i32 = arith.constant 0 : i32
    %c0_i32_0 = arith.constant 0 : i32
    %c0_i32_1 = arith.constant 0 : i32
    return %arg0, %arg1, %arg2, %c0_i32, %c0_i32_0 : i32, i32, i32, i32, i32
  }
}

</mosaic_0001>

<bundles_post_ra>
// kernel: local_reverse_diffusion.1
= control target key start
LH: loop header
LB: loop body
LE: loop exit
PB: predicated region body
PF: predicated region fallthrough
CT: control target
= control target key end

     0   :  { %9 = vsyncpa [#allocation4], 0  ;;  %s1810_s0 = inlined_call_operand.vmem [shape: f32[2,2,16,4], index: 0, kind: input, shape index: {}]   ;;  %s1811_s1 = inlined_call_operand.vmem [shape: f32[2,16,1], index: 1, kind: input, shape index: {}]   ;;  %s1812_s2 = inlined_call_operand.vmem [shape: f32[2,4,8], index: 2, kind: input, shape index: {}]   ;;  %s1813_s3 = inlined_call_operand.vmem [shape: f32[8,4,4,4], index: 3, kind: input, shape index: {}]   ;;  %s1814_s4 = inlined_call_operand.hbm [shape: f32[8,8,4,2,8], index: 4, kind: output, shape index: {}]  }
   0x1   :  { %11 = vsyncpa [#allocation4 + $0x1], 0  ;;  %s1479_s15 = smov 0   ;;  %s1481_s16 = smov 0  }
   0x2   :  { %s1483_s17 = smov 0   ;;  %s1485_s18 = smov 0  }
   0x3   :  { %s1487_s19 = smov 0   ;;  %s1489_s20 = smov 0  }
   0x4   :  { %s1491_s21 = smov 0   ;;  %s1493_s22 = smov 0  }
   0x5 LB: > { %s1180_s23 = sadd.s32 4294967295, %s1444_s22   ;;  %s1181_s24 = sadd.s32 4294967294, %s1444_s22   ;;  %s1444_s22 = sphi %s1493_s22, %s17_s22   ;;  %s1440_s21 = sphi %s1491_s21, %s1824_s21   ;;  %s1436_s20 = sphi %s1489_s20, %s1823_s20   ;;  %s1432_s19 = sphi %s1487_s19, %s1822_s19   ;;  %s1428_s18 = sphi %s1485_s18, %s1821_s18   ;;  %s1424_s17 = sphi %s1483_s17, %s1820_s17   ;;  %s1420_s16 = sphi %s1481_s16, %s1819_s16   ;;  %s1416_s15 = sphi %s1479_s15, %s1818_s15  }
   0x6   : > { %s32_s25 = sadd.s32 1, %s1436_s20  ;;  %s36_s26 = sadd.s32 1, %s1440_s21 }
   0x7   : > { %p34_p0 = scmp.ge.s32.totalorder %s32_s25, 4  ;;  %p127_p1 = scmp.ne.s32.totalorder %s1424_s17, %s1420_s16 }
   0x8   : > { %p128_p2 = scmp.eq.s32.totalorder %s1444_s22, 0  ;;  %p161_p5 = scmp.eq.s32.totalorder %s1180_s23, 7 }
   0x9   : > { %s1826_s25 = smov (%p34_p0, %s32_s25), 0  ;;  %s1828_s26 = smov (!%p34_p0, %s36_s26), %s1440_s21 }
   0xa   : > { %s114_s27 = ssub.s32 %s1436_s20, %s1826_s25  ;;  %p1531_p3 = por %p128_p2, %p127_p1 }
   0xb   : > { %p38_p4 = scmp.ge.s32.totalorder %s1828_s26, 2  ;;  %p166_p6 = scmp.ne.s32.totalorder %s1420_s16, %s1416_s15 }
   0xc   : > { %p167_p7 = scmp.eq.s32.totalorder %s1181_s24, 7  ;;  %p1539_p8 = por %p161_p5, %p127_p1 }
   0xd   : > { %s1830_s26 = smov (%p38_p4, %s1828_s26), 0  ;;  %s120_s7 = sadd.s32 1, %s1424_s17 }
   0xe   : > { %p1543_p9 = por %p167_p7, %p166_p6  ;;  %s113_s5 = ssub.s32 %s1440_s21, %s1830_s26 }
   0xf   : > { %s115_s6 = sor.u32 %s114_s27, %s113_s5  ;;  %p1183_p11 = scmp.ge.s32.totalorder %s1444_s22, 8 }
  0x10   : > { %p118_p10 = scmp.eq.s32.totalorder %s115_s6, 0 }
  0x11   : > { %186 = sbr.rel (%p1183_p11) target bundleno = 32 (0x20), region = 20 }
  0x12   : > { %s1551_s8 = scalar_select %p118_p10, %s1424_s17, %s120_s7  }
  0x16   : > { %205 = sbr.rel (!%p1531_p3) target bundleno = 32 (0x20), region = 32  ;;  %s207_s9 = sand.u32 (%p1531_p3), 1, %s1424_s17  }
  0x17   : > { %s1287_s10 = sshll.u32 (%p1531_p3), %s1440_s21, 4  ;;  %s1184_s11 = sshll.u32 (%p1531_p3), %s207_s9, 4 }
  0x18   : > { %s213_s12 = sadd.s32 (%p1531_p3), %s1436_s20, %s1287_s10  ;;  %s209_s27 = scalar_lea.vmem (%p1531_p3), [#allocation2], %s1184_s11 }
  0x19   : > { %s1187_s13 = sshll.u32 (%p1531_p3), %s213_s12, 2 }
  0x1a   : > { %s215_s24 = scalar_lea.vmem (%p1531_p3), %s1813_s3, %s1187_s13 }
  0x1b   : > { %v232_v0 = vld [vmem:[%s215_s24] sm:$0xf]  ;;  %v234_v1 = vld [vmem:[%s215_s24 + $0x10] sm:$0xf] }
  0x1c   : > { %v236_v2 = vld [vmem:[%s215_s24 + $0x20] sm:$0xf]  ;;  %233 = vst [vmem:[%s209_s27] sm:$0xf] %v232_v0  ;;  %v238_v3 = vld [vmem:[%s215_s24 + $0x30] sm:$0xf] }
  0x1d   : > { %235 = vst [vmem:[%s209_s27 + $0x4] sm:$0xf] %v234_v1 }
  0x1e   : > { %237 = vst [vmem:[%s209_s27 + $0x8] sm:$0xf] %v236_v2 }
  0x1f   : > { %239 = vst [vmem:[%s209_s27 + $0xc] sm:$0xf] %v238_v3 }
  0x20 PF: > { %p1188_p12 = scmp.ge.s32.totalorder %s1444_s22, 1  ;;  %p270_p13 = scmp.lt.s32.totalorder %s1444_s22, 9 }
  0x22   : > { %p271_p0 = pnand %p1188_p12, %p270_p13 }
  0x23   : > { %s1565_s28 = sand.u32 (!%p271_p0), 1, %s1420_s16   ;;  %p312_p1 = scmp.lt.s32.totalorder (!%p271_p0), %s1432_s19, 1 }
  0x24   : > { %274 = sbr.rel (%p271_p0) target bundleno = 382 (0x17e), region = 73  ;;  %s1189_s5 = sshll.u32 (!%p271_p0), %s1565_s28, 4 }
  0x25   : > { %s1569_s6 = scalar_lea.vmem (!%p271_p0), [#allocation2], %s1189_s5 }
  0x29   : > { %vm339_vm0 = vcmask 1041409   ;;  %vm342_vm1 = vcmask 1042434   ;;  %v328_v4 = vld [vmem:[%s1569_s6] sm:$0x1]  ;;  %v329_v5 = vld [vmem:[%s1569_s6 + $0x4] sm:$0x1] }
  0x2a   : > { %v330_v6 = vld [vmem:[%s1569_s6 + $0x8] sm:$0x1]  ;;  %v331_v7 = vld [vmem:[%s1569_s6 + $0xc] sm:$0x1]  ;;  %v338_v8 = vrot.slane %v329_v5, 7  ;;  %vm345_vm2 = vcmask 1043459  }
  0x2b   : > { %v341_v9 = vrot.slane %v330_v6, 6  ;;  %v344_v10 = vrot.slane %v331_v7, 5  ;;  %s1576_s7 = scalar_select %p312_p1, %s1432_s19, 1  ;;  %v514_v11 = vld [vmem:[%s1569_s6 + $0x1] sm:$0x1]  ;;  %vm354_vm3 = vcmask 1043456  }
  0x2c   : > { %v515_v12 = vld [vmem:[%s1569_s6 + $0x5] sm:$0x1]  ;;  %v340_v13 = vsel %vm339_vm0, %v338_v8, %v328_v4  ;;  %v516_v14 = vld [vmem:[%s1569_s6 + $0x9] sm:$0x1]  ;;  %v517_v15 = vld [vmem:[%s1569_s6 + $0xd] sm:$0x1] }
  0x2d   : > { %v524_v16 = vrot.slane %v515_v12, 7  ;;  %v343_v17 = vsel %vm342_vm1, %v341_v9, %v340_v13  ;;  %s1288_s9 = sshll.u32 %s1576_s7, 5  ;;  %vm347_vm4 = vcmask 31744   ;;  %v526_v18 = vrot.slane %v516_v14, 6  ;;  %v683_v20 = vld [vmem:[%s1569_s6 + $0x2] sm:$0x1] }
  0x2e   : > { %v528_v19 = vrot.slane %v517_v15, 5  ;;  %v346_v21 = vsel %vm345_vm2, %v344_v10, %v343_v17  ;;  %s316_s12 = scalar_lea.vmem %s1810_s0, %s1288_s9  ;;  %v684_v23 = vld [vmem:[%s1569_s6 + $0x6] sm:$0x1]  ;;  %v685_v24 = vld [vmem:[%s1569_s6 + $0xa] sm:$0x1]  ;;  %s1289_s10 = sshll.u32 %s1576_s7, 4 }
  0x2f   : > { %v525_v22 = vsel %vm339_vm0, %v524_v16, %v514_v11  ;;  %v686_v25 = vld [vmem:[%s1569_s6 + $0xe] sm:$0x1]  ;;  %1195 = vmatpush.msk.msra.mxu0 %vm354_vm3, %v346_v21  ;;  %1200 = vmatpush.msk.msra.mxu1 %vm354_vm3, %v346_v21  ;;  %v332_v26 = vld [vmem:[%s316_s12] sm:$0xff]  ;;  %v1198_v27 = vld [vmem:[%s316_s12 + $0x10] sm:$0xff]  ;;  %v693_v29 = vrot.slane %v684_v23, 7  ;;  %v695_v30 = vrot.slane %v685_v24, 6  ;;  %s321_s13 = scalar_lea.vmem %s1811_s1, %s1289_s10 }
  0x30   : > { %v527_v28 = vsel %vm342_vm1, %v526_v18, %v525_v22  ;;  %v697_v31 = vrot.slane %v686_v25, 5  ;;  %1196 = vmatmul.msk.f32.vlgmr.msra.gmra.mxu0 %vm347_vm4, %v332_v26  ;;  %1201 = vmatmul.msk.f32.vlgmr.msra.gmra.mxu1 %vm347_vm4, %v1198_v27  ;;  %v853_v34 = vld [vmem:[%s1569_s6 + $0x7] sm:$0x1]  ;;  %v854_v37 = vld [vmem:[%s1569_s6 + $0xb] sm:$0x1]  ;;  %v1446_v53 = vmov 0  }
  0x31   : > { %v529_v32 = vsel %vm345_vm2, %v528_v19, %v527_v28  ;;  %v694_v33 = vsel %vm339_vm0, %v693_v29, %v683_v20  ;;  %v862_v38 = vrot.slane %v853_v34, 7  ;;  %v333_v39 = vld [vmem:[%s316_s12 + $0x8] sm:$0xff]  ;;  %v1199_v40 = vld [vmem:[%s316_s12 + $0x18] sm:$0xff]  ;;  %v852_v41 = vld [vmem:[%s1569_s6 + $0x3] sm:$0x1]  ;;  %v864_v43 = vrot.slane %v854_v37, 6  ;;  %1377 = vset.pattern.permute.xlu0 %v1446_v53 }
  0x32   : > { %1210 = vmatpush.msk.msrb.mxu0 %vm354_vm3, %v529_v32  ;;  %1215 = vmatpush.msk.msrb.mxu1 %vm354_vm3, %v529_v32  ;;  %v696_v35 = vsel %vm342_vm1, %v695_v30, %v694_v33  ;;  %v855_v42 = vld [vmem:[%s1569_s6 + $0xf] sm:$0x1]  ;;  %v1203_v48 = vld [vmem:[%s1812_s2 + $0x4] sm:$0xf]  ;;  %v380_v49 = vld [vmem:[%s1812_s2] sm:$0xf] }
  0x33   : > { %v698_v36 = vsel %vm345_vm2, %v697_v31, %v696_v35  ;;  %v863_v44 = vsel %vm339_vm0, %v862_v38, %v852_v41  ;;  %v866_v45 = vrot.slane %v855_v42, 5  ;;  %1204 = vmatpush.msk.msra.mxu2 %vm354_vm3, %v1203_v48  ;;  %1207 = vmatpush.msk.msra.mxu3 %vm354_vm3, %v380_v49  ;;  %v1218_v50 = vld [vmem:[%s1812_s2 + $0x4] sm:$0xf]  ;;  %v561_v51 = vld [vmem:[%s1812_s2] sm:$0xf]  ;;  %v327_v54 = vld [vmem:[%s321_s13 + $0x8] sm:$0xff] }
  0x34   : > { %1233 = vmatpush.msk.msra.mxu0 %vm354_vm3, %v698_v36  ;;  %1238 = vmatpush.msk.msra.mxu1 %vm354_vm3, %v698_v36  ;;  %v865_v46 = vsel %vm342_vm1, %v864_v43, %v863_v44  ;;  %v326_v52 = vld [vmem:[%s321_s13] sm:$0xff]  ;;  %s1190_s10 = sshll.u32 %s1565_s28, 6  ;;  %vm505_vm5 = vcmask 58368   ;;  %s1022_s12 = scalar_lea.sflag [#allocation4], %s1565_s28 }
  0x35   : > { %v867_v47 = vsel %vm345_vm2, %v866_v45, %v865_v46  ;;  %1219 = vmatpush.msk.msrb.mxu2 %vm354_vm3, %v1218_v50  ;;  %1222 = vmatpush.msk.msrb.mxu3 %vm354_vm3, %v561_v51  ;;  %v1241_v55 = vld [vmem:[%s1812_s2 + $0x4] sm:$0xf]  ;;  %v730_v56 = vld [vmem:[%s1812_s2] sm:$0xf]  ;;  %s1686_s11 = scalar_lea.vmem [#allocation3], %s1190_s10 }
  0x36   : > { %481 = vperm.xlu0 %1377, %v326_v52   ;;  %v1264_v61 = vld [vmem:[%s1812_s2 + $0x4] sm:$0xf]  ;;  %v899_v62 = vld [vmem:[%s1812_s2] sm:$0xf] }
  0x38   : > { %1197 = vmatmul.msk.f32.gmra.mxu0 %vm347_vm4, %v333_v39  ;;  %1202 = vmatmul.msk.f32.gmra.mxu1 %vm347_vm4, %v1199_v40 }
  0x3e   : > { %486 = vperm.xlu0 %1377, %v327_v54  }
  0x40   : > { %1211 = vmatmul.msk.f32.vlgmr.msrb.gmra.mxu0 %vm347_vm4, %v332_v26  ;;  %1216 = vmatmul.msk.f32.vlgmr.msrb.gmra.mxu1 %vm347_vm4, %v1198_v27 }
  0x41   : > { %1256 = vmatpush.msk.msrb.mxu0 %vm354_vm3, %v867_v47  ;;  %1261 = vmatpush.msk.msrb.mxu1 %vm354_vm3, %v867_v47 }
  0x48   : > { %1212 = vmatmul.msk.f32.gmra.mxu0 %vm347_vm4, %v333_v39  ;;  %1217 = vmatmul.msk.f32.gmra.mxu1 %vm347_vm4, %v1199_v40 }
  0x50   : > { %1234 = vmatmul.msk.f32.vlgmr.msra.gmra.mxu0 %vm347_vm4, %v332_v26  ;;  %1239 = vmatmul.msk.f32.vlgmr.msra.gmra.mxu1 %vm347_vm4, %v1198_v27 }
  0x58   : > { %1235 = vmatmul.msk.f32.gmra.mxu0 %vm347_vm4, %v333_v39  ;;  %1240 = vmatmul.msk.f32.gmra.mxu1 %vm347_vm4, %v1199_v40 }
  0x60   : > { %1257 = vmatmul.msk.f32.vlgmr.msrb.gmra.mxu0 %vm347_vm4, %v332_v26  ;;  %1262 = vmatmul.msk.f32.vlgmr.msrb.gmra.mxu1 %vm347_vm4, %v1198_v27 }
  0x68   : > { %1258 = vmatmul.msk.f32.gmra.mxu0 %vm347_vm4, %v333_v39  ;;  %1263 = vmatmul.msk.f32.gmra.mxu1 %vm347_vm4, %v1199_v40 }
  0xa8   : > { %v1682_v11 = vpop.permute.xlu0 %481 }
  0xad   : > { %v374_v57 = vpop.f32.mrf.mxu0  ;;  %v407_v58 = vpop.f32.mrf.mxu1 }
  0xae   : > { %1205 = vmatmul.msk.f32.vlgmr.msra.gmra.mxu2 %vm347_vm4, %v407_v58  ;;  %1208 = vmatmul.msk.f32.vlgmr.msra.gmra.mxu3 %vm347_vm4, %v374_v57 }
  0xaf   : > { %1242 = vmatpush.msk.msra.mxu2 %vm354_vm3, %v1241_v55  ;;  %1245 = vmatpush.msk.msra.mxu3 %vm354_vm3, %v730_v56 }
  0xb0   : > { %v1692_v19 = vpop.permute.xlu0 %486 }
  0xb5   : > { %v377_v59 = vpop.f32.mrf.mxu0  ;;  %v410_v60 = vpop.f32.mrf.mxu1 }
  0xb6   : > { %1206 = vmatmul.msk.f32.gmra.mxu2 %vm347_vm4, %v410_v60  ;;  %1209 = vmatmul.msk.f32.gmra.mxu3 %vm347_vm4, %v377_v59 }
  0xbd   : > { %v555_v63 = vpop.f32.mrf.mxu0  ;;  %v587_v0 = vpop.f32.mrf.mxu1 }
  0xbe   : > { %1220 = vmatmul.msk.f32.vlgmr.msrb.gmra.mxu2 %vm347_vm4, %v587_v0  ;;  %1223 = vmatmul.msk.f32.vlgmr.msrb.gmra.mxu3 %vm347_vm4, %v555_v63 }
  0xbf   : > { %1265 = vmatpush.msk.msrb.mxu2 %vm354_vm3, %v1264_v61  ;;  %1268 = vmatpush.msk.msrb.mxu3 %vm354_vm3, %v899_v62 }
  0xc5   : > { %v558_v1 = vpop.f32.mrf.mxu0  ;;  %v590_v2 = vpop.f32.mrf.mxu1 }
  0xc6   : > { %1221 = vmatmul.msk.f32.gmra.mxu2 %vm347_vm4, %v590_v2  ;;  %1224 = vmatmul.msk.f32.gmra.mxu3 %vm347_vm4, %v558_v1 }
  0xcd   : > { %v724_v3 = vpop.f32.mrf.mxu0  ;;  %v756_v4 = vpop.f32.mrf.mxu1 }
  0xce   : > { %1243 = vmatmul.msk.f32.vlgmr.msra.gmra.mxu2 %vm347_vm4, %v756_v4  ;;  %1246 = vmatmul.msk.f32.vlgmr.msra.gmra.mxu3 %vm347_vm4, %v724_v3 }
  0xd5   : > { %v727_v5 = vpop.f32.mrf.mxu0  ;;  %v759_v6 = vpop.f32.mrf.mxu1 }
  0xd6   : > { %1244 = vmatmul.msk.f32.gmra.mxu2 %vm347_vm4, %v759_v6  ;;  %1247 = vmatmul.msk.f32.gmra.mxu3 %vm347_vm4, %v727_v5 }
  0xdd   : > { %v893_v7 = vpop.f32.mrf.mxu0  ;;  %v925_v8 = vpop.f32.mrf.mxu1 }
  0xde   : > { %1266 = vmatmul.msk.f32.vlgmr.msrb.gmra.mxu2 %vm347_vm4, %v925_v8  ;;  %1269 = vmatmul.msk.f32.vlgmr.msrb.gmra.mxu3 %vm347_vm4, %v893_v7 }
  0xe5   : > { %v896_v9 = vpop.f32.mrf.mxu0  ;;  %v928_v10 = vpop.f32.mrf.mxu1 }
  0xe6   : > { %1267 = vmatmul.msk.f32.gmra.mxu2 %vm347_vm4, %v928_v10  ;;  %1270 = vmatmul.msk.f32.gmra.mxu3 %vm347_vm4, %v896_v9 }
 0x131   : > { %v441_v12 = vpop.f32.mrf.mxu2  ;;  %v473_v13 = vpop.f32.mrf.mxu3 }
 0x132   : > { %v474_v14 = vadd.f32 %v473_v13, %v441_v12 }
 0x134   : > { %v489_v15 = vadd.f32 %v1682_v11, %v474_v14 }
 0x136   : > { %v493_v16 = vrot.slane %v489_v15, 2  ;;  %v494_v17 = vrot.slane %v489_v15, 4  ;;  %v495_v18 = vrot.slane %v489_v15, 6  ;;  %506 = vst.msk [vmem:[%s1686_s11] sm:$0x3] %vm505_vm5, %v489_v15 }
 0x138   : > { %507 = vst.msk [vmem:[%s1686_s11 + $0x8] sm:$0x3] %vm505_vm5, %v493_v16 }
 0x139   : > { %508 = vst.msk [vmem:[%s1686_s11 + $0x10] sm:$0x3] %vm505_vm5, %v494_v17  ;;  %v444_v20 = vpop.f32.mrf.mxu2  ;;  %v476_v21 = vpop.f32.mrf.mxu3 }
 0x13a   : > { %509 = vst.msk [vmem:[%s1686_s11 + $0x18] sm:$0x3] %vm505_vm5, %v495_v18  ;;  %v477_v22 = vadd.f32 %v476_v21, %v444_v20 }
 0x13c   : > { %v490_v23 = vadd.f32 %v1692_v19, %v477_v22 }
 0x13e   : > { %v496_v24 = vrot.slane %v490_v23, 2  ;;  %v497_v25 = vrot.slane %v490_v23, 4  ;;  %v498_v26 = vrot.slane %v490_v23, 6  ;;  %510 = vst.msk [vmem:[%s1686_s11 + $0x20] sm:$0x3] %vm505_vm5, %v490_v23 }
 0x140   : > { %511 = vst.msk [vmem:[%s1686_s11 + $0x28] sm:$0x3] %vm505_vm5, %v496_v24 }
 0x141   : > { %512 = vst.msk [vmem:[%s1686_s11 + $0x30] sm:$0x3] %vm505_vm5, %v497_v25  ;;  %v620_v27 = vpop.f32.mrf.mxu2  ;;  %v652_v28 = vpop.f32.mrf.mxu3 }
 0x142   : > { %513 = vst.msk [vmem:[%s1686_s11 + $0x38] sm:$0x3] %vm505_vm5, %v498_v26  ;;  %v653_v29 = vadd.f32 %v652_v28, %v620_v27 }
 0x144   : > { %v658_v30 = vadd.f32 %v653_v29, %v1682_v11 }
 0x146   : > { %v662_v31 = vrot.slane %v658_v30, 2  ;;  %v663_v32 = vrot.slane %v658_v30, 4  ;;  %v664_v33 = vrot.slane %v658_v30, 6  ;;  %1225 = vst.msk [vmem:[%s1686_s11 + $0x2] sm:$0x3] %vm505_vm5, %v658_v30 }
 0x148   : > { %1226 = vst.msk [vmem:[%s1686_s11 + $0xa] sm:$0x3] %vm505_vm5, %v662_v31 }
 0x149   : > { %1227 = vst.msk [vmem:[%s1686_s11 + $0x12] sm:$0x3] %vm505_vm5, %v663_v32  ;;  %v623_v34 = vpop.f32.mrf.mxu2  ;;  %v655_v35 = vpop.f32.mrf.mxu3 }
 0x14a   : > { %1228 = vst.msk [vmem:[%s1686_s11 + $0x1a] sm:$0x3] %vm505_vm5, %v664_v33  ;;  %v656_v36 = vadd.f32 %v655_v35, %v623_v34 }
 0x14c   : > { %v659_v37 = vadd.f32 %v656_v36, %v1692_v19 }
 0x14e   : > { %v665_v38 = vrot.slane %v659_v37, 2  ;;  %v666_v39 = vrot.slane %v659_v37, 4  ;;  %v667_v40 = vrot.slane %v659_v37, 6  ;;  %1229 = vst.msk [vmem:[%s1686_s11 + $0x22] sm:$0x3] %vm505_vm5, %v659_v37 }
 0x150   : > { %1230 = vst.msk [vmem:[%s1686_s11 + $0x2a] sm:$0x3] %vm505_vm5, %v665_v38 }
 0x151   : > { %1231 = vst.msk [vmem:[%s1686_s11 + $0x32] sm:$0x3] %vm505_vm5, %v666_v39  ;;  %v789_v41 = vpop.f32.mrf.mxu2  ;;  %v821_v42 = vpop.f32.mrf.mxu3 }
 0x152   : > { %1232 = vst.msk [vmem:[%s1686_s11 + $0x3a] sm:$0x3] %vm505_vm5, %v667_v40  ;;  %v822_v43 = vadd.f32 %v821_v42, %v789_v41 }
 0x154   : > { %v827_v44 = vadd.f32 %v822_v43, %v1682_v11 }
 0x156   : > { %v831_v45 = vrot.slane %v827_v44, 2  ;;  %v832_v46 = vrot.slane %v827_v44, 4  ;;  %v833_v47 = vrot.slane %v827_v44, 6  ;;  %1248 = vst.msk [vmem:[%s1686_s11 + $0x4] sm:$0x3] %vm505_vm5, %v827_v44 }
 0x158   : > { %1249 = vst.msk [vmem:[%s1686_s11 + $0xc] sm:$0x3] %vm505_vm5, %v831_v45 }
 0x159   : > { %1250 = vst.msk [vmem:[%s1686_s11 + $0x14] sm:$0x3] %vm505_vm5, %v832_v46  ;;  %v792_v48 = vpop.f32.mrf.mxu2  ;;  %v824_v49 = vpop.f32.mrf.mxu3 }
 0x15a   : > { %1251 = vst.msk [vmem:[%s1686_s11 + $0x1c] sm:$0x3] %vm505_vm5, %v833_v47  ;;  %v825_v50 = vadd.f32 %v824_v49, %v792_v48 }
 0x15c   : > { %v828_v51 = vadd.f32 %v825_v50, %v1692_v19 }
 0x15e   : > { %v834_v52 = vrot.slane %v828_v51, 2  ;;  %v835_v53 = vrot.slane %v828_v51, 4  ;;  %v836_v54 = vrot.slane %v828_v51, 6  ;;  %1252 = vst.msk [vmem:[%s1686_s11 + $0x24] sm:$0x3] %vm505_vm5, %v828_v51 }
 0x160   : > { %1253 = vst.msk [vmem:[%s1686_s11 + $0x2c] sm:$0x3] %vm505_vm5, %v834_v52 }
 0x161   : > { %1254 = vst.msk [vmem:[%s1686_s11 + $0x34] sm:$0x3] %vm505_vm5, %v835_v53  ;;  %v958_v55 = vpop.f32.mrf.mxu2  ;;  %v990_v56 = vpop.f32.mrf.mxu3 }
 0x162   : > { %1255 = vst.msk [vmem:[%s1686_s11 + $0x3c] sm:$0x3] %vm505_vm5, %v836_v54  ;;  %v991_v57 = vadd.f32 %v990_v56, %v958_v55 }
 0x164   : > { %v996_v58 = vadd.f32 %v991_v57, %v1682_v11 }
 0x166   : > { %v1000_v59 = vrot.slane %v996_v58, 2  ;;  %v1001_v60 = vrot.slane %v996_v58, 4  ;;  %v1002_v61 = vrot.slane %v996_v58, 6  ;;  %1271 = vst.msk [vmem:[%s1686_s11 + $0x6] sm:$0x3] %vm505_vm5, %v996_v58 }
 0x168   : > { %1272 = vst.msk [vmem:[%s1686_s11 + $0xe] sm:$0x3] %vm505_vm5, %v1000_v59 }
 0x169   : > { %1273 = vst.msk [vmem:[%s1686_s11 + $0x16] sm:$0x3] %vm505_vm5, %v1001_v60  ;;  %v961_v62 = vpop.f32.mrf.mxu2  ;;  %v993_v63 = vpop.f32.mrf.mxu3 }
 0x16a   : > { %1274 = vst.msk [vmem:[%s1686_s11 + $0x1e] sm:$0x3] %vm505_vm5, %v1002_v61  ;;  %v994_v0 = vadd.f32 %v993_v63, %v961_v62 }
 0x16c   : > { %v997_v1 = vadd.f32 %v994_v0, %v1692_v19 }
 0x16e   : > { %v1003_v2 = vrot.slane %v997_v1, 2  ;;  %v1004_v3 = vrot.slane %v997_v1, 4  ;;  %v1005_v4 = vrot.slane %v997_v1, 6  ;;  %1275 = vst.msk [vmem:[%s1686_s11 + $0x26] sm:$0x3] %vm505_vm5, %v997_v1 }
 0x170   : > { %1276 = vst.msk [vmem:[%s1686_s11 + $0x2e] sm:$0x3] %vm505_vm5, %v1003_v2 }
 0x171   : > { %1277 = vst.msk [vmem:[%s1686_s11 + $0x36] sm:$0x3] %vm505_vm5, %v1004_v3 }
 0x172   : > { %1278 = vst.msk [vmem:[%s1686_s11 + $0x3e] sm:$0x3] %vm505_vm5, %v1005_v4 }
 0x173   : > { %s1290_s13 = sshll.u32 %s1428_s18, 3  ;;  %s1291_s14 = sshll.u32 %s1432_s19, 7 }
 0x174   : > { %s1037_s23 = sadd.s32 %s1291_s14, %s1290_s13  ;;  %s1050_s24 = sshll.u32 %s1686_s11, 4  ;;  %s1051_s24 = int_to_ptr.vmem [resolvable:$true] %s1050_s24 }
 0x175   : > { %s1284_s27 = sshll.u32 %s1037_s23, 1  ;;  %s1447_s9 = smov 256  }
 0x176   : > { %s1039_s6 = scalar_lea.hbm %s1814_s4, %s1284_s27  ;;  %1292 = sst [smem:[#allocation6]] (%p1539_p8), %s1447_s9 }
 0x177   : > { %s1052_s28 = sshll.u32 %s1039_s6, 4  ;;  %s1448_s10 = smov 1024   ;;  %s1053_s28 = int_to_ptr.hbm [resolvable:$true] %s1052_s28 }
 0x178   : > { %1293 = sst [smem:[#allocation6 + $0x1]] (%p1539_p8), %s1448_s10  ;;  %s1449_s18 = smov 8  }
 0x179   : > { %1294 = sst [smem:[#allocation6 + $0x2]] (%p1539_p8), %s1449_s18  ;;  %s1450_s19 = smov 32  }
 0x17a   : > { %1295 = sst [smem:[#allocation6 + $0x3]] (%p1539_p8), %s1450_s19  ;;  %s1451_s11 = smov 2  }
 0x17b   : > { %1296 = sst [smem:[#allocation6 + $0x4]] (%p1539_p8), %s1450_s19  ;;  %s1452_s13 = smov [#allocation5]  }
 0x17c   : > { %1297 = sst [smem:[#allocation6 + $0x5]] (%p1539_p8), %s1451_s11  ;;  %s1453_s14 = smov 0  }
 0x17d   : > { %1298 = dma.general (%p1539_p8), %s1051_s24, 1024, %s1053_s28, %s1022_s12, %s1452_s13, [#allocation6], %s1453_s14, 0  }
 0x17e PF: > { %p1304_p2 = scmp.ge.s32.totalorder %s1444_s22, 2  ;;  %s1080_s23 = sand.u32 1, %s1416_s15  }
 0x17f   : > { %s1081_s27 = scalar_lea.sflag [#allocation4], %s1080_s23 }
 0x180   : > { %p1301_p3 = pnand %p1304_p2, %p1543_p9 }
 0x182   : > { %p1302_p4 = pneg %p1301_p3 }
 0x184   : > { %1411 = dma.done.wait (%p1302_p4), %s1081_s27, 1024  }
 0x185   : > { %1413 = vsyncadd (%p1302_p4), %s1081_s27, 4294966272  ;;  %s17_s22 = sadd.s32 1, %s1444_s22   ;;  %s1818_s15 = smov %s1420_s16 }
 0x186   : > { %p14_p5 = scmp.ge.s32.totalorder %s17_s22, 10   ;;  %s1819_s16 = smov %s1424_s17 }
 0x187   : > { %s1820_s17 = smov %s1551_s8  ;;  %s1821_s18 = smov %s1436_s20 }
 0x188   : > { %s1822_s19 = smov %s1440_s21  ;;  %s1823_s20 = smov %s1826_s25 }
 0x189   : > { %s1824_s21 = smov %s1830_s26  ;;  %16 = sbr.rel (!%p14_p5) target bundleno = 5 (0x5), region = 133 }
 0x18e   :  { %1087 = vsyncpa [#allocation4], 1 }
 0x18f   :  { %1089 = vsyncpa [#allocation4 + $0x1], 1 }

</bundles_post_ra>
